<compile_context>
chip_gen: v5e
topology: v5e:2x2
jax: 0.10.0
libtpu: 0.0.40
codegen_flags: <defaults>
</compile_context>

<pallas_src>
import functools

import jax
import jax.numpy as jnp
from jax.experimental import pallas as pl
from jax.experimental.pallas import tpu as pltpu


def _round_up(x, m):
    return ((x + m - 1) // m) * m


# ----------------------------------------------------------------------------
# Kernels
# ----------------------------------------------------------------------------
def _resident_kernel(emb_row_ref, emb_colT_ref, thr_ref, tgt_col_ref,
                     tgt_row_ref, col_bias_ref, loss_ref):
    """Column operand fully resident in VMEM; one MXU contraction per row tile.

    emb_row_ref : (tile_m, pad_d) bf16   -- row tile (changes with grid i)
    emb_colT_ref: (pad_d, pad_b)  bf16   -- whole transposed matrix, resident
    thr_ref     : (tile_m, 1)     f32
    tgt_col_ref : (tile_m, 1)     int32
    tgt_row_ref : (1, pad_b)      int32
    col_bias_ref: (1, pad_b)      f32    -- 0 for real columns, -inf for padding
    loss_ref    : (tile_m, 1)     f32
    """
    sim = jnp.dot(emb_row_ref[...], emb_colT_ref[...],
                  preferred_element_type=jnp.float32)        # (tile_m, pad_b)
    masked = jnp.where(tgt_col_ref[...] != tgt_row_ref[...], sim, -jnp.inf)
    masked = masked + col_bias_ref[...]                       # pad cols -> -inf
    rowmax = jnp.max(masked, axis=-1, keepdims=True)
    loss_ref[...] = jnp.maximum(rowmax - thr_ref[...], 0.0)


def _streamed_kernel(emb_row_ref, emb_colT_ref, thr_ref, tgt_col_ref,
                     tgt_row_ref, col_bias_ref, loss_ref, rowmax_ref,
                     *, lane_groups):
    """Fallback: stream (pad_d, tile_n) column tiles across the j grid axis."""
    j = pl.program_id(1)

    @pl.when(j == 0)
    def _():
        rowmax_ref[...] = jnp.full(rowmax_ref.shape, -jnp.inf, rowmax_ref.dtype)

    # (tile_m, pad_d) x (pad_d, tile_n) -> clean MXU matmul, f32 accumulate.
    sim = jnp.dot(emb_row_ref[...], emb_colT_ref[...],
                  preferred_element_type=jnp.float32)        # (tile_m, tile_n)
    masked = jnp.where(tgt_col_ref[...] != tgt_row_ref[...], sim, -jnp.inf)
    masked = masked + col_bias_ref[...]

    # Deferred cross-lane reduction: per step only VPU lane-group maxes into a
    # (tile_m, 128) running max; single XLU cross-lane reduce at the last step.
    acc = rowmax_ref[...]
    for g in range(lane_groups):
        acc = jnp.maximum(acc, masked[:, g * 128:(g + 1) * 128])
    rowmax_ref[...] = acc

    @pl.when(j == pl.num_programs(1) - 1)
    def _():
        rowmax = jnp.max(rowmax_ref[...], axis=-1, keepdims=True)
        loss_ref[...] = jnp.maximum(rowmax - thr_ref[...], 0.0)


# ----------------------------------------------------------------------------
# Wrapper
# ----------------------------------------------------------------------------
def local_push_loss(normalized_embeddings, cos_theta, target, *,
                    margin=0.1, weight=1.0, smart_margin=True,
                    force_streamed=False):
    """Pallas TPU implementation of LocalPushLoss.forward (forward only)."""
    assert margin >= 0.0
    if weight == 0.0:
        return jnp.float32(0.0)

    B, D = normalized_embeddings.shape
    tgt = target.astype(jnp.int32)

    # Smart-margin gather hoisted out of the kernel: (B, C) cos_theta never
    # enters VMEM.
    if smart_margin:
        center = jnp.take_along_axis(
            cos_theta.astype(jnp.float32), tgt[:, None], axis=1)      # (B, 1)
        thr = jnp.maximum(center, margin) - margin                    # >= 0
    else:
        thr = jnp.full((B, 1), float(margin), dtype=jnp.float32)

    pad_b = _round_up(B, 128)
    pad_d = _round_up(D, 128)

    # Generation-aware VMEM sizing (v7x has 64 MiB/TC vs 128 MiB on v5e/v6e).
    try:
        vmem_cap = int(pltpu.get_tpu_info().vmem_capacity_bytes)
    except Exception:
        vmem_cap = 64 * 1024 * 1024     # conservative (v7x) fallback
    vmem_limit = int(0.7 * vmem_cap)
    budget = int(0.6 * vmem_cap)

    # Row tile: large (v6e roofline), a divisor of pad_b, halved once if that
    # would leave a single row tile (keep >= 2 for v7x megacore).
    tile_m = 512
    while pad_b % tile_m != 0:
        tile_m //= 2
    if pad_b // tile_m < 2 and tile_m >= 16:
        tile_m //= 2

    # bf16 embeddings feed the MXU natively; f32 accumulation preserves loss.
    emb_p = jnp.zeros((pad_b, pad_d), jnp.bfloat16)
    emb_p = emb_p.at[:B, :D].set(normalized_embeddings.astype(jnp.bfloat16))
    emb_pT = emb_p.T                                   # (pad_d, pad_b), one-time
    tgt_p = jnp.full((pad_b,), -1, jnp.int32).at[:B].set(tgt)
    thr_p = jnp.zeros((pad_b, 1), jnp.float32).at[:B].set(thr)
    tgt_col = tgt_p.reshape(pad_b, 1)
    tgt_row = tgt_p.reshape(1, pad_b)
    col_bias = jnp.where(jnp.arange(pad_b) < B, 0.0,
                         -jnp.inf).astype(jnp.float32).reshape(1, pad_b)

    # ------------------------------------------------------------------ path
    def resident_bytes(tm):
        col_slab = 2 * pad_d * pad_b * 2          # resident operand (2x: buffers)
        row_tiles = 2 * tm * pad_d * 2            # double-buffered row tile
        sim_tmp = 2 * tm * pad_b * 4              # f32 sim + masked intermediates
        small = pad_b * 12 + tm * 12
        return col_slab + row_tiles + sim_tmp + small + (1 << 20)

    resident_tm = tile_m
    while resident_tm > 8 and resident_bytes(resident_tm) > budget:
        resident_tm //= 2
    use_resident = (not force_streamed) and resident_bytes(resident_tm) <= budget

    if use_resident:
        tm = resident_tm
        grid = (pad_b // tm,)
        losses = pl.pallas_call(
            _resident_kernel,
            out_shape=jax.ShapeDtypeStruct((pad_b, 1), jnp.float32),
            grid_spec=pltpu.PrefetchScalarGridSpec(
                num_scalar_prefetch=0,
                grid=grid,
                in_specs=[
                    pl.BlockSpec((tm, pad_d), lambda i: (i, 0)),     # row tile
                    pl.BlockSpec((pad_d, pad_b), lambda i: (0, 0)),  # resident
                    pl.BlockSpec((tm, 1), lambda i: (i, 0)),         # thr
                    pl.BlockSpec((tm, 1), lambda i: (i, 0)),         # tgt col
                    pl.BlockSpec((1, pad_b), lambda i: (0, 0)),      # tgt row
                    pl.BlockSpec((1, pad_b), lambda i: (0, 0)),      # col bias
                ],
                out_specs=pl.BlockSpec((tm, 1), lambda i: (i, 0)),
            ),
            compiler_params=pltpu.CompilerParams(
                dimension_semantics=("parallel",),
                vmem_limit_bytes=vmem_limit,
            ),
        )(emb_p, emb_pT, thr_p, tgt_col, tgt_row, col_bias)
    else:
        tm = tile_m
        tile_n = 256
        while pad_b % tile_n != 0:
            tile_n //= 2

        def streamed_bytes(tm_, tn_):
            return (2 * tm_ * pad_d * 2 + 2 * pad_d * tn_ * 2 +
                    2 * tm_ * tn_ * 4 + tm_ * 128 * 4 + (1 << 20))

        while streamed_bytes(tm, tile_n) > budget and tm > 64:
            tm //= 2
        while streamed_bytes(tm, tile_n) > budget and tile_n > 128:
            tile_n //= 2

        grid = (pad_b // tm, pad_b // tile_n)
        lane_groups = tile_n // 128
        kernel = functools.partial(_streamed_kernel, lane_groups=lane_groups)

        losses = pl.pallas_call(
            kernel,
            out_shape=jax.ShapeDtypeStruct((pad_b, 1), jnp.float32),
            grid_spec=pltpu.PrefetchScalarGridSpec(
                num_scalar_prefetch=0,
                grid=grid,
                in_specs=[
                    pl.BlockSpec((tm, pad_d), lambda i, j: (i, 0)),      # rows
                    pl.BlockSpec((pad_d, tile_n), lambda i, j: (0, j)),  # cols^T
                    pl.BlockSpec((tm, 1), lambda i, j: (i, 0)),          # thr
                    pl.BlockSpec((tm, 1), lambda i, j: (i, 0)),          # tgt col
                    pl.BlockSpec((1, tile_n), lambda i, j: (0, j)),      # tgt row
                    pl.BlockSpec((1, tile_n), lambda i, j: (0, j)),      # bias
                ],
                out_specs=pl.BlockSpec((tm, 1), lambda i, j: (i, 0)),
                scratch_shapes=[pltpu.VMEM((tm, 128), jnp.float32)],
            ),
            compiler_params=pltpu.CompilerParams(
                dimension_semantics=("parallel", "arbitrary"),
                vmem_limit_bytes=vmem_limit,
            ),
        )(emb_p, emb_pT, thr_p, tgt_col, tgt_row, col_bias)

    # Padded rows are excluded from the mean.
    # TODO(synk): forward-only; training use would need a custom_vjp.
    return jnp.float32(weight) * jnp.mean(losses[:B, 0])


# ----------------------------------------------------------------------------
# Pure-JAX reference (mirrors the PyTorch module) and self-test
# ----------------------------------------------------------------------------
def _reference(normalized_embeddings, cos_theta, target, *,
               margin=0.1, weight=1.0, smart_margin=True):
    if weight == 0.0:
        return jnp.float32(0.0)
    sim = normalized_embeddings @ normalized_embeddings.T
    pairs_mask = target[:, None] != target[None, :]
    if smart_margin:
        center_sim = cos_theta[jnp.arange(cos_theta.shape[0]), target]
        threshold = jnp.maximum(center_sim, margin)[:, None] - margin
    else:
        threshold = margin
    mask = pairs_mask & (sim > threshold)
    filtered = jnp.where(mask, sim - threshold, jnp.zeros_like(sim))
    losses = jnp.max(filtered, axis=-1)
    return weight * jnp.mean(losses)


if __name__ == "__main__":
    def make_inputs(key, B, D, C):
        k1, k2, k3 = jax.random.split(key, 3)
        emb = jax.random.normal(k1, (B, D), dtype=jnp.float32)
        emb = emb / jnp.linalg.norm(emb, axis=1, keepdims=True)
        cos_theta = jnp.tanh(jax.random.normal(k2, (B, C), dtype=jnp.float32))
        target = jax.random.randint(k3, (B,), 0, C, dtype=jnp.int32)
        return emb, cos_theta, target

    key = jax.random.PRNGKey(0)
    ka, kb = jax.random.split(key)

    # Small shapes: exercises the VMEM-resident path.
    emb, cos_theta, target = make_inputs(ka, B=8, D=32, C=16)
    for smart in (True, False):
        loss = jax.block_until_ready(
            local_push_loss(emb, cos_theta, target,
                            margin=0.1, weight=1.0, smart_margin=smart))
        ref = _reference(emb, cos_theta, target,
                         margin=0.1, weight=1.0, smart_margin=smart)
        # bf16 matmul inputs => loosened tolerance vs the f32 reference.
        assert jnp.allclose(loss, ref, atol=2e-2, rtol=2e-2), (smart, loss, ref)

    # Moderate shape: check resident AND forced-streamed paths vs reference.
    emb2, cos2, tgt2 = make_inputs(kb, B=300, D=64, C=32)
    ref2 = _reference(emb2, cos2, tgt2, margin=0.1, weight=1.0,
                      smart_margin=True)
    for force_streamed in (False, True):
        loss2 = jax.block_until_ready(
            local_push_loss(emb2, cos2, tgt2, margin=0.1, weight=1.0,
                            smart_margin=True, force_streamed=force_streamed))
        assert jnp.allclose(loss2, ref2, atol=2e-2, rtol=2e-2), (
            force_streamed, loss2, ref2)

    print("KERNEL_OK")
</pallas_src>

<mosaic_0001>
module attributes {stable_mosaic.version = 11 : i64} {
  func.func @_resident_kernel(%arg0: i32, %arg1: memref<64x128xbf16, #tpu.memory_space<vmem>>, %arg2: memref<128x128xbf16, #tpu.memory_space<vmem>>, %arg3: memref<64x1xf32, #tpu.memory_space<vmem>>, %arg4: memref<64x1xi32, #tpu.memory_space<vmem>>, %arg5: memref<1x128xi32, #tpu.memory_space<vmem>>, %arg6: memref<1x128xf32, #tpu.memory_space<vmem>>, %arg7: memref<64x1xf32, #tpu.memory_space<vmem>>) attributes {dimension_semantics = [#tpu.dimension_semantics<parallel>], iteration_bounds = array<i64: 2>, scalar_prefetch = 0 : i64, scratch_operands = 0 : i64, tpu.core_type = #tpu.core_type<tc>, window_params = [{transform_indices = @transform_0, window_bounds = array<i64: 64, 128>}, {pipeline_mode = #tpu.pipeline_mode<synchronous>, transform_indices = @transform_1, window_bounds = array<i64: 128, 128>}, {transform_indices = @transform_2, window_bounds = array<i64: 64, 1>}, {transform_indices = @transform_3, window_bounds = array<i64: 64, 1>}, {pipeline_mode = #tpu.pipeline_mode<synchronous>, transform_indices = @transform_4, window_bounds = array<i64: 1, 128>}, {pipeline_mode = #tpu.pipeline_mode<synchronous>, transform_indices = @transform_5, window_bounds = array<i64: 1, 128>}, {transform_indices = @transform_6, window_bounds = array<i64: 64, 1>}]} {
    %c0 = arith.constant 0 : index
    %c0_0 = arith.constant 0 : index
    %0 = vector.load %arg1[%c0, %c0_0] : memref<64x128xbf16, #tpu.memory_space<vmem>>, vector<64x128xbf16>
    %c0_1 = arith.constant 0 : index
    %c0_2 = arith.constant 0 : index
    %1 = vector.load %arg2[%c0_1, %c0_2] : memref<128x128xbf16, #tpu.memory_space<vmem>>, vector<128x128xbf16>
    %cst = arith.constant dense<0.000000e+00> : vector<64x128xf32>
    %2 = tpu.matmul %0, %1, %cst {dimension_numbers = #tpu.dot_dimension_numbers<[1], [0], [0], [1], [0, 0, 1, 1], [], []>} : vector<64x128xbf16>, vector<128x128xbf16>, vector<64x128xf32> -> vector<64x128xf32>
    %c0_3 = arith.constant 0 : index
    %c0_4 = arith.constant 0 : index
    %3 = vector.load %arg4[%c0_3, %c0_4] : memref<64x1xi32, #tpu.memory_space<vmem>>, vector<64x1xi32>
    %c0_5 = arith.constant 0 : index
    %c0_6 = arith.constant 0 : index
    %4 = vector.load %arg5[%c0_5, %c0_6] : memref<1x128xi32, #tpu.memory_space<vmem>>, vector<1x128xi32>
    %5 = vector.broadcast %3 : vector<64x1xi32> to vector<64x128xi32>
    %6 = vector.broadcast %4 : vector<1x128xi32> to vector<64x128xi32>
    %7 = arith.cmpi ne, %5, %6 : vector<64x128xi32>
    %cst_7 = arith.constant 0xFF800000 : f32
    %8 = vector.broadcast %cst_7 : f32 to vector<64x128xf32>
    %9 = arith.select %7, %2, %8 : vector<64x128xi1>, vector<64x128xf32>
    %c0_8 = arith.constant 0 : index
    %c0_9 = arith.constant 0 : index
    %10 = vector.load %arg6[%c0_8, %c0_9] : memref<1x128xf32, #tpu.memory_space<vmem>>, vector<1x128xf32>
    %11 = vector.broadcast %10 : vector<1x128xf32> to vector<64x128xf32>
    %12 = arith.addf %9, %11 : vector<64x128xf32>
    %cst_10 = arith.constant dense<0xFF800000> : vector<64xf32>
    %13 = vector.multi_reduction <maximumf>, %12, %cst_10 [1] : vector<64x128xf32> to vector<64xf32>
    %14 = vector.shape_cast %13 : vector<64xf32> to vector<64x1xf32>
    %c0_11 = arith.constant 0 : index
    %c0_12 = arith.constant 0 : index
    %15 = vector.load %arg3[%c0_11, %c0_12] : memref<64x1xf32, #tpu.memory_space<vmem>>, vector<64x1xf32>
    %16 = arith.subf %14, %15 : vector<64x1xf32>
    %cst_13 = arith.constant 0.000000e+00 : f32
    %17 = vector.broadcast %cst_13 : f32 to vector<64x1xf32>
    %18 = arith.maximumf %16, %17 : vector<64x1xf32>
    %c0_14 = arith.constant 0 : index
    %c0_15 = arith.constant 0 : index
    %19 = vector.load %arg7[%c0_14, %c0_15] : memref<64x1xf32, #tpu.memory_space<vmem>>, vector<64x1xf32>
    tpu.vector_store %arg7[%c0_14, %c0_15], %18 {strides = array<i32>} : memref<64x1xf32, #tpu.memory_space<vmem>>, vector<64x1xf32>,
    return
  }
  func.func @transform_0(%arg0: i32) -> (i32, i32) {
    %c0_i32 = arith.constant 0 : i32
    %c0_i32_0 = arith.constant 0 : i32
    return %arg0, %c0_i32 : i32, i32
  }
  func.func @transform_1(%arg0: i32) -> (i32, i32) {
    %c0_i32 = arith.constant 0 : i32
    %c0_i32_0 = arith.constant 0 : i32
    %c0_i32_1 = arith.constant 0 : i32
    return %c0_i32, %c0_i32_0 : i32, i32
  }
  func.func @transform_2(%arg0: i32) -> (i32, i32) {
    %c0_i32 = arith.constant 0 : i32
    %c0_i32_0 = arith.constant 0 : i32
    return %arg0, %c0_i32 : i32, i32
  }
  func.func @transform_3(%arg0: i32) -> (i32, i32) {
    %c0_i32 = arith.constant 0 : i32
    %c0_i32_0 = arith.constant 0 : i32
    return %arg0, %c0_i32 : i32, i32
  }
  func.func @transform_4(%arg0: i32) -> (i32, i32) {
    %c0_i32 = arith.constant 0 : i32
    %c0_i32_0 = arith.constant 0 : i32
    %c0_i32_1 = arith.constant 0 : i32
    return %c0_i32, %c0_i32_0 : i32, i32
  }
  func.func @transform_5(%arg0: i32) -> (i32, i32) {
    %c0_i32 = arith.constant 0 : i32
    %c0_i32_0 = arith.constant 0 : i32
    %c0_i32_1 = arith.constant 0 : i32
    return %c0_i32, %c0_i32_0 : i32, i32
  }
  func.func @transform_6(%arg0: i32) -> (i32, i32) {
    %c0_i32 = arith.constant 0 : i32
    %c0_i32_0 = arith.constant 0 : i32
    return %arg0, %c0_i32 : i32, i32
  }
}

</mosaic_0001>

<bundles_post_ra>
// kernel: tpu_custom_call.1
= control target key start
LH: loop header
LB: loop body
LE: loop exit
PB: predicated region body
PF: predicated region fallthrough
CT: control target
= control target key end

     0   :  { %s772_s21 = smov 0   ;;  %s872_s0 = inlined_call_operand.vmem [shape: bf16[128,128], index: 0, kind: input, shape index: {}]   ;;  %s873_s1 = inlined_call_operand.vmem [shape: bf16[128,128], index: 1, kind: input, shape index: {}]   ;;  %s874_s2 = inlined_call_operand.vmem [shape: f32[128,1], index: 2, kind: input, shape index: {}]   ;;  %s875_s3 = inlined_call_operand.vmem [shape: s32[128,1], index: 3, kind: input, shape index: {}]   ;;  %s876_s4 = inlined_call_operand.vmem [shape: s32[1,128], index: 4, kind: input, shape index: {}]   ;;  %s877_s5 = inlined_call_operand.vmem [shape: f32[1,128], index: 5, kind: input, shape index: {}]   ;;  %s878_s6 = inlined_call_operand.vmem [shape: f32[128,1], index: 6, kind: output, shape index: {}]  }
   0x1 LB: > { %s615_s22 = sadd.s32 4294967295, %s734_s21   ;;  %p619_p0 = scmp.ge.s32.totalorder %s734_s21, 1  ;;  %s734_s21 = sphi %s772_s21, %s16_s21  }
   0x2   : > { %p235_p1 = scmp.lt.s32.totalorder %s734_s21, 3 }
   0x4   : > { %p236_p2 = pnand %p619_p0, %p235_p1 }
   0x5   : > { %s620_s25 = sshll.u32 (!%p236_p2), %s615_s22, 3 }
   0x6   : > { %239 = sbr.rel (%p236_p2) target bundleno = 318 (0x13e), region = 44  ;;  %p276_p3 = scmp.lt.s32.totalorder (!%p236_p2), %s620_s25, 15 }
   0xb   : > { %v689_v0 = vld [vmem:[%s873_s1 + $0x38] sm:$0xff]  ;;  %v736_v1 = vmov 0   ;;  %v688_v2 = vld [vmem:[%s873_s1 + $0x30] sm:$0xff]  ;;  %s880_s25 = smov (!%p276_p3, %s620_s25), 15  ;;  %v687_v3 = vld [vmem:[%s873_s1 + $0x28] sm:$0xff]  ;;  %vm526_vm8 = vcmask 7168  }
   0xc   : > { %723 = vset.pattern.permute.xlu0 %v736_v1  ;;  %724 = vset.pattern.permute.xlu1 %v736_v1  ;;  %s789_s28 = sshll.u32 %s880_s25, 3  ;;  %v686_v6 = vld [vmem:[%s873_s1 + $0x20] sm:$0xff]  ;;  %v685_v10 = vld [vmem:[%s873_s1 + $0x18] sm:$0xff]  ;;  %v684_v12 = vld [vmem:[%s873_s1 + $0x10] sm:$0xff]  ;;  %s621_s18 = sshll.u32 %s880_s25, 2 }
   0xd   : > { %395 = vmatpush.bf16.msra.mxu0 %v689_v0  ;;  %690 = vmatpush.bf16.msra.mxu1 %v689_v0  ;;  %s798_s9 = scalar_lea.vmem %s875_s3, %s789_s28  ;;  %v683_v15 = vld [vmem:[%s873_s1 + $0x8] sm:$0xff]  ;;  %v682_v16 = vld [vmem:[%s873_s1] sm:$0xff]  ;;  %s279_s24 = scalar_lea.vmem %s872_s0, %s621_s18 }
   0xe   : > { %691 = vmatpush.bf16.msra.mxu2 %v689_v0  ;;  %692 = vmatpush.bf16.msra.mxu3 %v689_v0  ;;  %v424_v4 = vld [vmem:[%s798_s9] sm:$0xff]  ;;  %v426_v5 = vld [vmem:[%s798_s9 + $0x10] sm:$0xff]  ;;  %v425_v8 = vld [vmem:[%s798_s9 + $0x8] sm:$0xff]  ;;  %s837_s8 = scalar_lea.vmem %s874_s2, %s789_s28  ;;  %s845_s11 = scalar_lea.vmem %s878_s6, %s789_s28 }
   0xf   : > { %725 = vset.pattern.permute.xlu2 %v736_v1  ;;  %434 = vperm.xlu0 %723, %v424_v4   ;;  %v428_v7 = vld [vmem:[%s798_s9 + $0x20] sm:$0xff]  ;;  %v427_v9 = vld [vmem:[%s798_s9 + $0x18] sm:$0xff]  ;;  %v429_v11 = vld [vmem:[%s798_s9 + $0x28] sm:$0xff] }
  0x10   : > { %440 = vperm.xlu1 %724, %v426_v5   ;;  %446 = vperm.xlu2 %725, %v428_v7   ;;  %v430_v13 = vld [vmem:[%s798_s9 + $0x30] sm:$0xff]  ;;  %v431_v14 = vld [vmem:[%s798_s9 + $0x38] sm:$0xff]  ;;  %v678_v17 = vld [vmem:[%s279_s24] sm:$0xff] }
  0x11   : > { %396 = vmatpush.bf16.msra.mxu0 %v688_v2  ;;  %693 = vmatpush.bf16.msra.mxu1 %v688_v2  ;;  %v679_v18 = vld [vmem:[%s279_s24 + $0x8] sm:$0xff]  ;;  %v680_v19 = vld [vmem:[%s279_s24 + $0x10] sm:$0xff]  ;;  %v681_v20 = vld [vmem:[%s279_s24 + $0x18] sm:$0xff] }
  0x12   : > { %694 = vmatpush.bf16.msra.mxu2 %v688_v2  ;;  %695 = vmatpush.bf16.msra.mxu3 %v688_v2  ;;  %v726_v22 = vld [vmem:[%s876_s4] ss:$0 sm:$0xff]  ;;  %v504_v55 = vld [vmem:[%s837_s8 + $0x10] sm:$0xff]  ;;  %v503_v1 = vld [vmem:[%s837_s8 + $0x8] sm:$0xff] }
  0x13   : > { %v727_v25 = vld [vmem:[%s877_s5] ss:$0 sm:$0xff]  ;;  %v508_v63 = vld [vmem:[%s837_s8 + $0x30] sm:$0xff] }
  0x14   : > { %v502_v56 = vld [vmem:[%s837_s8] sm:$0xff] }
  0x15   : > { %397 = vmatpush.bf16.msra.mxu0 %v687_v3  ;;  %696 = vmatpush.bf16.msra.mxu1 %v687_v3  ;;  %v506_v0 = vld [vmem:[%s837_s8 + $0x20] sm:$0xff] }
  0x16   : > { %697 = vmatpush.bf16.msra.mxu2 %v687_v3  ;;  %698 = vmatpush.bf16.msra.mxu3 %v687_v3 }
  0x17   : > { %437 = vperm.xlu0 %723, %v425_v8  }
  0x18   : > { %443 = vperm.xlu1 %724, %v427_v9   ;;  %449 = vperm.xlu2 %725, %v429_v11   ;;  %v505_v11 = vld [vmem:[%s837_s8 + $0x18] sm:$0xff] }
  0x19   : > { %398 = vmatpush.bf16.msra.mxu0 %v686_v6  ;;  %699 = vmatpush.bf16.msra.mxu1 %v686_v6 }
  0x1a   : > { %700 = vmatpush.bf16.msra.mxu2 %v686_v6  ;;  %701 = vmatpush.bf16.msra.mxu3 %v686_v6 }
  0x1d   : > { %399 = vmatpush.bf16.msra.mxu0 %v685_v10  ;;  %702 = vmatpush.bf16.msra.mxu1 %v685_v10 }
  0x1e   : > { %703 = vmatpush.bf16.msra.mxu2 %v685_v10  ;;  %704 = vmatpush.bf16.msra.mxu3 %v685_v10 }
  0x1f   : > { %452 = vperm.xlu0 %723, %v430_v13  }
  0x20   : > { %455 = vperm.xlu1 %724, %v431_v14  }
  0x21   : > { %400 = vmatpush.bf16.msra.mxu0 %v684_v12  ;;  %705 = vmatpush.bf16.msra.mxu1 %v684_v12 }
  0x22   : > { %706 = vmatpush.bf16.msra.mxu2 %v684_v12  ;;  %707 = vmatpush.bf16.msra.mxu3 %v684_v12  ;;  %v507_v12 = vld [vmem:[%s837_s8 + $0x28] sm:$0xff] }
  0x25   : > { %401 = vmatpush.bf16.msra.mxu0 %v683_v15  ;;  %708 = vmatpush.bf16.msra.mxu1 %v683_v15 }
  0x26   : > { %709 = vmatpush.bf16.msra.mxu2 %v683_v15  ;;  %710 = vmatpush.bf16.msra.mxu3 %v683_v15 }
  0x29   : > { %402 = vmatpush.bf16.msra.mxu0 %v682_v16  ;;  %711 = vmatpush.bf16.msra.mxu1 %v682_v16 }
  0x2a   : > { %712 = vmatpush.bf16.msra.mxu2 %v682_v16  ;;  %713 = vmatpush.bf16.msra.mxu3 %v682_v16 }
  0x2c   : > { %403 = vmatmul.bf16.vlgmr.msra.gmra.mxu0 %v678_v17  ;;  %408 = vmatmul.bf16.vlgmr.msra.gmra.mxu1 %v679_v18 }
  0x2d   : > { %413 = vmatmul.bf16.vlgmr.msra.gmra.mxu2 %v680_v19  ;;  %418 = vmatmul.bf16.vlgmr.msra.gmra.mxu3 %v681_v20  ;;  %v509_v19 = vld [vmem:[%s837_s8 + $0x38] sm:$0xff] }
  0x6a   : > { %v447_v30 = vpop.permute.xlu2 %446 }
  0x6b   : > { %vm462_vm2 = vcmp.ne.s32.totalorder %v447_v30, %v726_v22 }
  0x72   : > { %v450_v44 = vpop.permute.xlu2 %449 }
  0x73   : > { %vm463_vm6 = vcmp.ne.s32.totalorder %v450_v44, %v726_v22 }
  0x81   : > { %v435_v21 = vpop.permute.xlu0 %434 }
  0x82   : > { %v441_v24 = vpop.permute.xlu1 %440  ;;  %vm458_vm0 = vcmp.ne.s32.totalorder %v435_v21, %v726_v22 }
  0x83   : > { %vm460_vm1 = vcmp.ne.s32.totalorder %v441_v24, %v726_v22 }
  0x89   : > { %v438_v23 = vpop.permute.xlu0 %437 }
  0x8a   : > { %vm459_vm4 = vcmp.ne.s32.totalorder %v438_v23, %v726_v22  ;;  %v444_v39 = vpop.permute.xlu1 %443 }
  0x8b   : > { %vm461_vm5 = vcmp.ne.s32.totalorder %v444_v39, %v726_v22 }
  0x91   : > { %v453_v33 = vpop.permute.xlu0 %452 }
  0x92   : > { %vm464_vm3 = vcmp.ne.s32.totalorder %v453_v33, %v726_v22  ;;  %v456_v50 = vpop.permute.xlu1 %455 }
  0x93   : > { %vm465_vm7 = vcmp.ne.s32.totalorder %v456_v50, %v726_v22 }
  0xa9   : > { %v404_v26 = vpop.f32.mrf.mxu0  ;;  %v409_v27 = vpop.f32.mrf.mxu1 }
  0xaa   : > { %v466_v28 = vsel %vm458_vm0, %v404_v26, -inf  ;;  %v468_v29 = vsel %vm460_vm1, %v409_v27, -inf }
  0xab   : > { %v480_v31 = vadd.f32 %v727_v25, %v468_v29  ;;  %v478_v32 = vadd.f32 %v727_v25, %v466_v28 }
  0xad   : > { %490 = vmax.xlane.f32.xlu1 %v480_v31  ;;  %486 = vmax.xlane.f32.xlu2 %v478_v32 }
  0xb0   : > { %v414_v34 = vpop.f32.mrf.mxu2  ;;  %v419_v35 = vpop.f32.mrf.mxu3 }
  0xb1   : > { %v470_v36 = vsel %vm462_vm2, %v414_v34, -inf  ;;  %v472_v37 = vsel %vm464_vm3, %v419_v35, -inf  ;;  %v406_v38 = vpop.f32.mrf.mxu0  ;;  %v411_v45 = vpop.f32.mrf.mxu1 }
  0xb2   : > { %v467_v40 = vsel %vm459_vm4, %v406_v38, -inf  ;;  %v482_v41 = vadd.f32 %v727_v25, %v470_v36  ;;  %v484_v42 = vadd.f32 %v727_v25, %v472_v37  ;;  %v469_v46 = vsel %vm461_vm5, %v411_v45, -inf }
  0xb3   : > { %v479_v43 = vadd.f32 %v727_v25, %v467_v40  ;;  %v481_v49 = vadd.f32 %v727_v25, %v469_v46 }
  0xb5   : > { %498 = vmax.xlane.f32.xlu1 %v484_v42  ;;  %494 = vmax.xlane.f32.xlu2 %v482_v41 }
  0xb6   : > { %488 = vmax.xlane.f32.xlu0 %v479_v43 }
  0xb8   : > { %v416_v47 = vpop.f32.mrf.mxu2  ;;  %v421_v52 = vpop.f32.mrf.mxu3 }
  0xb9   : > { %v471_v48 = vsel %vm463_vm6, %v416_v47, -inf  ;;  %v473_v53 = vsel %vm465_vm7, %v421_v52, -inf }
  0xba   : > { %v483_v51 = vadd.f32 %v727_v25, %v471_v48  ;;  %v485_v54 = vadd.f32 %v727_v25, %v473_v53 }
  0xbd   : > { %492 = vmax.xlane.f32.xlu2 %v481_v49 }
  0xbe   : > { %496 = vmax.xlane.f32.xlu0 %v483_v51 }
  0xc5   : > { %500 = vmax.xlane.f32.xlu2 %v485_v54 }
 0x120   : > { %v491_v57 = vpop.xlane.xlu1 %490  ;;  %v487_v58 = vpop.xlane.xlu2 %486 }
 0x121   : > { %v512_v59 = vsub.f32 %v491_v57, %v504_v55  ;;  %v510_v60 = vsub.f32 %v487_v58, %v502_v56 }
 0x123   : > { %v520_v61 = vmax.f32 %v512_v59, 0.0  ;;  %v518_v62 = vmax.f32 %v510_v60, 0.0 }
 0x125   : > { %529 = vst.msk [vmem:[%s845_s11 + $0x10] sm:$0xff] %vm526_vm8, %v520_v61 }
 0x126   : > { %527 = vst.msk [vmem:[%s845_s11] sm:$0xff] %vm526_vm8, %v518_v62 }
 0x128   : > { %v499_v2 = vpop.xlane.xlu1 %498  ;;  %v495_v3 = vpop.xlane.xlu2 %494 }
 0x129   : > { %v516_v4 = vsub.f32 %v499_v2, %v508_v63  ;;  %v514_v5 = vsub.f32 %v495_v3, %v506_v0  ;;  %v489_v6 = vpop.xlane.xlu0 %488 }
 0x12a   : > { %v511_v7 = vsub.f32 %v489_v6, %v503_v1 }
 0x12b   : > { %v524_v8 = vmax.f32 %v516_v4, 0.0  ;;  %v522_v9 = vmax.f32 %v514_v5, 0.0 }
 0x12c   : > { %v519_v10 = vmax.f32 %v511_v7, 0.0 }
 0x12d   : > { %533 = vst.msk [vmem:[%s845_s11 + $0x30] sm:$0xff] %vm526_vm8, %v524_v8 }
 0x12e   : > { %531 = vst.msk [vmem:[%s845_s11 + $0x20] sm:$0xff] %vm526_vm8, %v522_v9 }
 0x12f   : > { %528 = vst.msk [vmem:[%s845_s11 + $0x8] sm:$0xff] %vm526_vm8, %v519_v10 }
 0x130   : > { %v493_v13 = vpop.xlane.xlu2 %492 }
 0x131   : > { %v513_v14 = vsub.f32 %v493_v13, %v505_v11  ;;  %v497_v15 = vpop.xlane.xlu0 %496 }
 0x132   : > { %v515_v16 = vsub.f32 %v497_v15, %v507_v12 }
 0x133   : > { %v521_v17 = vmax.f32 %v513_v14, 0.0 }
 0x134   : > { %v523_v18 = vmax.f32 %v515_v16, 0.0 }
 0x135   : > { %530 = vst.msk [vmem:[%s845_s11 + $0x18] sm:$0xff] %vm526_vm8, %v521_v17 }
 0x136   : > { %532 = vst.msk [vmem:[%s845_s11 + $0x28] sm:$0xff] %vm526_vm8, %v523_v18 }
 0x138   : > { %v501_v20 = vpop.xlane.xlu2 %500 }
 0x139   : > { %v517_v21 = vsub.f32 %v501_v20, %v509_v19 }
 0x13b   : > { %v525_v22 = vmax.f32 %v517_v21, 0.0 }
 0x13d   : > { %534 = vst.msk [vmem:[%s845_s11 + $0x38] sm:$0xff] %vm526_vm8, %v525_v22 }
 0x13e PF: > { %s16_s21 = sadd.s32 1, %s734_s21  }
 0x13f   : > { %p13_p4 = scmp.ge.s32.totalorder %s16_s21, 4  }
 0x141   :  { %15 = sbr.rel (!%p13_p4) target bundleno = 1 (0x1), region = 80 }

</bundles_post_ra>
